<compile_context>
chip_gen: v7x
topology: tpu7x:2x2x1
jax: 0.10.0
libtpu: 0.0.40
codegen_flags: <defaults>
</compile_context>

<pallas_src>
import functools

import numpy as np
import jax
import jax.numpy as jnp
from jax.experimental import pallas as pl
from jax.experimental.pallas import tpu as pltpu

LANE = 128      # lane width: last-dim alignment
SUBLANE = 8     # sublane count: second-to-last-dim alignment


def _round_up(n, m):
    return ((n + m - 1) // m) * m


def _cdiv(a, b):
    return (a + b - 1) // b


def _pad2d(a, rows, cols):
    return jnp.pad(a, ((0, rows - a.shape[0]), (0, cols - a.shape[1])))


@functools.lru_cache(maxsize=None)
def _vmem_ceiling_bytes():
    """Generation-aware scoped-VMEM ceiling (~75% of physical per-core VMEM)."""
    try:
        cap = int(pltpu.get_tpu_info().vmem_capacity_bytes)
    except Exception:
        cap = 64 << 20          # conservative fallback: v7x has 64 MiB / TC
    return (cap * 3) // 4       # ~96 MiB on v5e/v6e, ~48 MiB on v7x


def dqn_kernel(x_ref, w1_ref, b1_ref, w2_ref, b2_ref, w3_ref, b3_ref, o_ref):
    # x arrives as f32 straight from HBM; cast to bf16 here (no extra XLA pass).
    x = x_ref[...].astype(jnp.bfloat16)

    # Layer 1: Linear + ReLU.  bf16 MXU operands, f32 accumulate / bias / ReLU.
    h1 = jnp.dot(x, w1_ref[...], preferred_element_type=jnp.float32)
    h1 = jnp.maximum(h1 + b1_ref[...], 0.0).astype(jnp.bfloat16)

    # Layer 2: Linear + ReLU.
    h2 = jnp.dot(h1, w2_ref[...], preferred_element_type=jnp.float32)
    h2 = jnp.maximum(h2 + b2_ref[...], 0.0).astype(jnp.bfloat16)

    # Layer 3: Linear (no activation) — lane-dense (128-padded) store.
    out = jnp.dot(h2, w3_ref[...], preferred_element_type=jnp.float32)
    o_ref[...] = (out + b3_ref[...]).astype(o_ref.dtype)


@functools.partial(jax.jit, static_argnames=("block_b", "single_buffer", "out_dtype"))
def _dqn_forward_impl(x, params, block_b, single_buffer, out_dtype):
    w1, b1, w2, b2, w3, b3 = (params[k] for k in ("w1", "b1", "w2", "b2", "w3", "b3"))
    B, in_size = x.shape
    hidden = w1.shape[1]
    out_size = w3.shape[1]
    out_dtype = np.dtype(x.dtype if out_dtype is None else out_dtype)
    out_elem = out_dtype.itemsize

    # Feature padding: contraction (input) axis only to a sublane multiple —
    # exact zero padding; hidden/output lane-dense (and 256-aligned when big
    # enough for the v6e/v7x MXU).
    in_p = _round_up(in_size, SUBLANE)
    hid_p = _round_up(hidden, 256 if hidden >= 256 else LANE)
    out_p = _round_up(out_size, LANE)

    # ---- adaptive batch tile -------------------------------------------------
    B8 = _round_up(B, SUBLANE)
    # >= 2 grid steps when the batch allows: a grid of (1,) would leave one
    # v7x TensorCore idle; weights stay resident so the only cost elsewhere is
    # ~0.35us of extra pipeline step overhead.
    n_tiles = max(_cdiv(B8, block_b), 2 if B8 >= 2 * SUBLANE else 1)
    tb = _round_up(_cdiv(B8, n_tiles), SUBLANE)

    w_bytes = (in_p * hid_p + hid_p * hid_p + hid_p * out_p) * 2     # bf16
    b_bytes = 3 * SUBLANE * max(hid_p, out_p) * 4                    # (8,N) f32 tiles
    weight_bufs = 1 if single_buffer else 2
    ceiling = _vmem_ceiling_bytes()

    def vmem_need(t):
        return (2 * t * in_p * 4              # double-buffered f32 x tiles
                + 2 * t * out_p * out_elem    # double-buffered output tiles
                + weight_bufs * (w_bytes + b_bytes)
                + 6 * t * hid_p * 4           # in-kernel intermediates (generous)
                + (4 << 20))                  # Mosaic internal scratch / margin

    # Shrink the tile (more grid steps) if the estimate exceeds the chip budget.
    while tb > SUBLANE and vmem_need(tb) > ceiling:
        n_tiles *= 2
        tb = _round_up(_cdiv(B8, n_tiles), SUBLANE)
    vmem_bytes = int(min(vmem_need(tb), ceiling))

    grid = (_cdiv(B, tb),)      # last block may be partial on the batch axis

    # ---- operands --------------------------------------------------------------
    # x stays f32, unpadded on the batch axis; feature pad is a no-op when
    # in_size is already a multiple of 8.  Weights/biases are tiny: pad + cast
    # in the wrapper is negligible.
    x_in = x if in_p == in_size else _pad2d(x, B, in_p)
    w1_p = _pad2d(w1, in_p, hid_p).astype(jnp.bfloat16)
    w2_p = _pad2d(w2, hid_p, hid_p).astype(jnp.bfloat16)
    w3_p = _pad2d(w3, hid_p, out_p).astype(jnp.bfloat16)
    b1_p = _pad2d(b1, 1, hid_p).astype(jnp.float32)
    b2_p = _pad2d(b2, 1, hid_p).astype(jnp.float32)
    b3_p = _pad2d(b3, 1, out_p).astype(jnp.float32)

    # Weights/biases: full-shape blocks with a constant block index -> VMEM
    # resident across batch tiles; single-buffered (no pointless double buffer)
    # when this build supports pipeline_mode=pl.Buffered(1).
    def resident(a):
        if single_buffer:
            return pl.BlockSpec(a.shape, lambda i: (0,) * a.ndim,
                                pipeline_mode=pl.Buffered(1))
        return pl.BlockSpec(a.shape, lambda i: (0,) * a.ndim)

    flops = 2 * B * (in_p * hid_p + hid_p * hid_p + hid_p * out_p)
    bytes_accessed = x_in.size * 4 + w_bytes + b_bytes + B * out_p * out_elem

    out_padded = pl.pallas_call(
        dqn_kernel,
        out_shape=jax.ShapeDtypeStruct((B, out_p), out_dtype),
        grid=grid,
        in_specs=[
            pl.BlockSpec((tb, in_p), lambda i: (i, 0)),   # x: tiled over batch
            resident(w1_p), resident(b1_p),
            resident(w2_p), resident(b2_p),
            resident(w3_p), resident(b3_p),
        ],
        out_specs=pl.BlockSpec((tb, out_p), lambda i: (i, 0)),
        compiler_params=pltpu.CompilerParams(
            dimension_semantics=("parallel",),
            vmem_limit_bytes=vmem_bytes,
        ),
        cost_estimate=pl.CostEstimate(
            flops=flops, transcendentals=0, bytes_accessed=bytes_accessed),
    )(x_in, w1_p, b1_p, w2_p, b2_p, w3_p, b3_p)

    # Only the lane padding is sliced off (no batch padding was added).
    # TODO(synk): consumers that can index the padded [B, out_p] buffer directly
    # (e.g. argmax over the first out_size lanes) should skip this extra pass.
    return out_padded[:, :out_size]


_SINGLE_BUFFER_OK = [True]   # flipped once if pl.Buffered(1) is rejected


def dqn_forward(x, params, *, block_b=1024, out_dtype=None):
    """x: [B, input_size] f32; params: dict of w1,b1,w2,b2,w3,b3 (f32, w as [in,out])."""
    if _SINGLE_BUFFER_OK[0]:
        try:
            return _dqn_forward_impl(x, params, block_b, True, out_dtype)
        except Exception:
            _SINGLE_BUFFER_OK[0] = False   # fall back to default double buffering
    return _dqn_forward_impl(x, params, block_b, False, out_dtype)


def init_params(key, input_size, hidden_size, output_size):
    """Mimics nn.Linear's uniform(-1/sqrt(fan_in), 1/sqrt(fan_in)) init.
    Weights stored transposed relative to PyTorch: [in, out]; bias [1, out]."""
    ks = jax.random.split(key, 6)

    def lin(kw, kb, fan_in, fan_out):
        bound = 1.0 / jnp.sqrt(fan_in)
        w = jax.random.uniform(kw, (fan_in, fan_out), jnp.float32, -bound, bound)
        b = jax.random.uniform(kb, (1, fan_out), jnp.float32, -bound, bound)
        return w, b

    w1, b1 = lin(ks[0], ks[1], input_size, hidden_size)
    w2, b2 = lin(ks[2], ks[3], hidden_size, hidden_size)
    w3, b3 = lin(ks[4], ks[5], hidden_size, output_size)
    return {"w1": w1, "b1": b1, "w2": w2, "b2": b2, "w3": w3, "b3": b3}


if __name__ == "__main__":
    key = jax.random.PRNGKey(0)
    k_x, k_p, k_x2 = jax.random.split(key, 3)

    batch, input_size, hidden_size, output_size = 8, 16, 32, 8

    x = jax.random.normal(k_x, (batch, input_size), jnp.float32)
    params = init_params(k_p, input_size, hidden_size, output_size)

    def ref_fwd(xx):
        h = jnp.maximum(xx @ params["w1"] + params["b1"], 0.0)
        h = jnp.maximum(h @ params["w2"] + params["b2"], 0.0)
        return h @ params["w3"] + params["b3"]

    out = jax.block_until_ready(dqn_forward(x, params))
    assert out.shape == (batch, output_size)
    assert out.dtype == x.dtype
    err = float(jnp.max(jnp.abs(out - ref_fwd(x))))
    assert jnp.allclose(out, ref_fwd(x), atol=5e-2, rtol=5e-2), f"max abs err = {err}"

    # Second call: batch that does not divide the tile — exercises the >=2-step
    # grid (both v7x TensorCores) and the partial boundary block on the batch axis.
    x2 = jax.random.normal(k_x2, (13, input_size), jnp.float32)
    out2 = jax.block_until_ready(dqn_forward(x2, params))
    assert out2.shape == (13, output_size)
    err2 = float(jnp.max(jnp.abs(out2 - ref_fwd(x2))))
    assert jnp.allclose(out2, ref_fwd(x2), atol=5e-2, rtol=5e-2), f"max abs err = {err2}"

    print("KERNEL_OK")
</pallas_src>

<mosaic_0001>
module attributes {stable_mosaic.version = 11 : i64} {
  func.func @dqn_kernel(%arg0: i32, %arg1: memref<8x16xf32, #tpu.memory_space<vmem>>, %arg2: memref<16x128xbf16, #tpu.memory_space<vmem>>, %arg3: memref<1x128xf32, #tpu.memory_space<vmem>>, %arg4: memref<128x128xbf16, #tpu.memory_space<vmem>>, %arg5: memref<1x128xf32, #tpu.memory_space<vmem>>, %arg6: memref<128x128xbf16, #tpu.memory_space<vmem>>, %arg7: memref<1x128xf32, #tpu.memory_space<vmem>>, %arg8: memref<8x128xf32, #tpu.memory_space<vmem>>) attributes {dimension_semantics = [#tpu.dimension_semantics<parallel>], iteration_bounds = array<i64: 1>, scalar_prefetch = 0 : i64, scratch_operands = 0 : i64, tpu.core_type = #tpu.core_type<tc>, window_params = [{transform_indices = @transform_0, window_bounds = array<i64: 8, 16>}, {pipeline_mode = #tpu.pipeline_mode<synchronous>, transform_indices = @transform_1, window_bounds = array<i64: 16, 128>}, {pipeline_mode = #tpu.pipeline_mode<synchronous>, transform_indices = @transform_2, window_bounds = array<i64: 1, 128>}, {pipeline_mode = #tpu.pipeline_mode<synchronous>, transform_indices = @transform_3, window_bounds = array<i64: 128, 128>}, {pipeline_mode = #tpu.pipeline_mode<synchronous>, transform_indices = @transform_4, window_bounds = array<i64: 1, 128>}, {pipeline_mode = #tpu.pipeline_mode<synchronous>, transform_indices = @transform_5, window_bounds = array<i64: 128, 128>}, {pipeline_mode = #tpu.pipeline_mode<synchronous>, transform_indices = @transform_6, window_bounds = array<i64: 1, 128>}, {transform_indices = @transform_7, window_bounds = array<i64: 8, 128>}]} {
    %c0 = arith.constant 0 : index
    %c0_0 = arith.constant 0 : index
    %0 = vector.load %arg1[%c0, %c0_0] : memref<8x16xf32, #tpu.memory_space<vmem>>, vector<8x16xf32>
    %1 = arith.truncf %0 : vector<8x16xf32> to vector<8x16xbf16>
    %c0_1 = arith.constant 0 : index
    %c0_2 = arith.constant 0 : index
    %2 = vector.load %arg2[%c0_1, %c0_2] : memref<16x128xbf16, #tpu.memory_space<vmem>>, vector<16x128xbf16>
    %cst = arith.constant dense<0.000000e+00> : vector<8x128xf32>
    %3 = tpu.matmul %1, %2, %cst {dimension_numbers = #tpu.dot_dimension_numbers<[1], [0], [0], [1], [0, 0, 1, 1], [], []>} : vector<8x16xbf16>, vector<16x128xbf16>, vector<8x128xf32> -> vector<8x128xf32>
    %c0_3 = arith.constant 0 : index
    %c0_4 = arith.constant 0 : index
    %4 = vector.load %arg3[%c0_3, %c0_4] : memref<1x128xf32, #tpu.memory_space<vmem>>, vector<1x128xf32>
    %5 = vector.broadcast %4 : vector<1x128xf32> to vector<8x128xf32>
    %6 = arith.addf %3, %5 : vector<8x128xf32>
    %cst_5 = arith.constant 0.000000e+00 : f32
    %7 = vector.broadcast %cst_5 : f32 to vector<8x128xf32>
    %8 = arith.maximumf %6, %7 : vector<8x128xf32>
    %9 = arith.truncf %8 : vector<8x128xf32> to vector<8x128xbf16>
    %c0_6 = arith.constant 0 : index
    %c0_7 = arith.constant 0 : index
    %10 = vector.load %arg4[%c0_6, %c0_7] : memref<128x128xbf16, #tpu.memory_space<vmem>>, vector<128x128xbf16>
    %cst_8 = arith.constant dense<0.000000e+00> : vector<8x128xf32>
    %11 = tpu.matmul %9, %10, %cst_8 {dimension_numbers = #tpu.dot_dimension_numbers<[1], [0], [0], [1], [0, 0, 1, 1], [], []>} : vector<8x128xbf16>, vector<128x128xbf16>, vector<8x128xf32> -> vector<8x128xf32>
    %c0_9 = arith.constant 0 : index
    %c0_10 = arith.constant 0 : index
    %12 = vector.load %arg5[%c0_9, %c0_10] : memref<1x128xf32, #tpu.memory_space<vmem>>, vector<1x128xf32>
    %13 = vector.broadcast %12 : vector<1x128xf32> to vector<8x128xf32>
    %14 = arith.addf %11, %13 : vector<8x128xf32>
    %cst_11 = arith.constant 0.000000e+00 : f32
    %15 = vector.broadcast %cst_11 : f32 to vector<8x128xf32>
    %16 = arith.maximumf %14, %15 : vector<8x128xf32>
    %17 = arith.truncf %16 : vector<8x128xf32> to vector<8x128xbf16>
    %c0_12 = arith.constant 0 : index
    %c0_13 = arith.constant 0 : index
    %18 = vector.load %arg6[%c0_12, %c0_13] : memref<128x128xbf16, #tpu.memory_space<vmem>>, vector<128x128xbf16>
    %cst_14 = arith.constant dense<0.000000e+00> : vector<8x128xf32>
    %19 = tpu.matmul %17, %18, %cst_14 {dimension_numbers = #tpu.dot_dimension_numbers<[1], [0], [0], [1], [0, 0, 1, 1], [], []>} : vector<8x128xbf16>, vector<128x128xbf16>, vector<8x128xf32> -> vector<8x128xf32>
    %c0_15 = arith.constant 0 : index
    %c0_16 = arith.constant 0 : index
    %20 = vector.load %arg7[%c0_15, %c0_16] : memref<1x128xf32, #tpu.memory_space<vmem>>, vector<1x128xf32>
    %21 = vector.broadcast %20 : vector<1x128xf32> to vector<8x128xf32>
    %22 = arith.addf %19, %21 : vector<8x128xf32>
    %c0_17 = arith.constant 0 : index
    %c0_18 = arith.constant 0 : index
    %23 = vector.load %arg8[%c0_17, %c0_18] : memref<8x128xf32, #tpu.memory_space<vmem>>, vector<8x128xf32>
    tpu.vector_store %arg8[%c0_17, %c0_18], %22 {strides = array<i32>} : memref<8x128xf32, #tpu.memory_space<vmem>>, vector<8x128xf32>,
    return
  }
  func.func @transform_0(%arg0: i32) -> (i32, i32) {
    %c0_i32 = arith.constant 0 : i32
    %c0_i32_0 = arith.constant 0 : i32
    return %arg0, %c0_i32 : i32, i32
  }
  func.func @transform_1(%arg0: i32) -> (i32, i32) {
    %c0_i32 = arith.constant 0 : i32
    %c0_i32_0 = arith.constant 0 : i32
    %c0_i32_1 = arith.constant 0 : i32
    return %c0_i32, %c0_i32_0 : i32, i32
  }
  func.func @transform_2(%arg0: i32) -> (i32, i32) {
    %c0_i32 = arith.constant 0 : i32
    %c0_i32_0 = arith.constant 0 : i32
    %c0_i32_1 = arith.constant 0 : i32
    return %c0_i32, %c0_i32_0 : i32, i32
  }
  func.func @transform_3(%arg0: i32) -> (i32, i32) {
    %c0_i32 = arith.constant 0 : i32
    %c0_i32_0 = arith.constant 0 : i32
    %c0_i32_1 = arith.constant 0 : i32
    return %c0_i32, %c0_i32_0 : i32, i32
  }
  func.func @transform_4(%arg0: i32) -> (i32, i32) {
    %c0_i32 = arith.constant 0 : i32
    %c0_i32_0 = arith.constant 0 : i32
    %c0_i32_1 = arith.constant 0 : i32
    return %c0_i32, %c0_i32_0 : i32, i32
  }
  func.func @transform_5(%arg0: i32) -> (i32, i32) {
    %c0_i32 = arith.constant 0 : i32
    %c0_i32_0 = arith.constant 0 : i32
    %c0_i32_1 = arith.constant 0 : i32
    return %c0_i32, %c0_i32_0 : i32, i32
  }
  func.func @transform_6(%arg0: i32) -> (i32, i32) {
    %c0_i32 = arith.constant 0 : i32
    %c0_i32_0 = arith.constant 0 : i32
    %c0_i32_1 = arith.constant 0 : i32
    return %c0_i32, %c0_i32_0 : i32, i32
  }
  func.func @transform_7(%arg0: i32) -> (i32, i32) {
    %c0_i32 = arith.constant 0 : i32
    %c0_i32_0 = arith.constant 0 : i32
    return %arg0, %c0_i32 : i32, i32
  }
}

module attributes {stable_mosaic.version = 11 : i64} {
  func.func @dqn_kernel(%arg0: i32, %arg1: memref<8x16xf32, #tpu.memory_space<vmem>>, %arg2: memref<16x128xbf16, #tpu.memory_space<vmem>>, %arg3: memref<1x128xf32, #tpu.memory_space<vmem>>, %arg4: memref<128x128xbf16, #tpu.memory_space<vmem>>, %arg5: memref<1x128xf32, #tpu.memory_space<vmem>>, %arg6: memref<128x128xbf16, #tpu.memory_space<vmem>>, %arg7: memref<1x128xf32, #tpu.memory_space<vmem>>, %arg8: memref<8x128xf32, #tpu.memory_space<vmem>>) attributes {dimension_semantics = [#tpu.dimension_semantics<parallel>], iteration_bounds = array<i64: 1>, scalar_prefetch = 0 : i64, scratch_operands = 0 : i64, tpu.core_type = #tpu.core_type<tc>, window_params = [{transform_indices = @transform_0, window_bounds = array<i64: 8, 16>}, {pipeline_mode = #tpu.pipeline_mode<synchronous>, transform_indices = @transform_1, window_bounds = array<i64: 16, 128>}, {pipeline_mode = #tpu.pipeline_mode<synchronous>, transform_indices = @transform_2, window_bounds = array<i64: 1, 128>}, {pipeline_mode = #tpu.pipeline_mode<synchronous>, transform_indices = @transform_3, window_bounds = array<i64: 128, 128>}, {pipeline_mode = #tpu.pipeline_mode<synchronous>, transform_indices = @transform_4, window_bounds = array<i64: 1, 128>}, {pipeline_mode = #tpu.pipeline_mode<synchronous>, transform_indices = @transform_5, window_bounds = array<i64: 128, 128>}, {pipeline_mode = #tpu.pipeline_mode<synchronous>, transform_indices = @transform_6, window_bounds = array<i64: 1, 128>}, {transform_indices = @transform_7, window_bounds = array<i64: 8, 128>}]} {
    %c0 = arith.constant 0 : index
    %c0_0 = arith.constant 0 : index
    %0 = vector.load %arg1[%c0, %c0_0] : memref<8x16xf32, #tpu.memory_space<vmem>>, vector<8x16xf32>
    %1 = arith.truncf %0 : vector<8x16xf32> to vector<8x16xbf16>
    %c0_1 = arith.constant 0 : index
    %c0_2 = arith.constant 0 : index
    %2 = vector.load %arg2[%c0_1, %c0_2] : memref<16x128xbf16, #tpu.memory_space<vmem>>, vector<16x128xbf16>
    %cst = arith.constant dense<0.000000e+00> : vector<8x128xf32>
    %3 = tpu.matmul %1, %2, %cst {dimension_numbers = #tpu.dot_dimension_numbers<[1], [0], [0], [1], [0, 0, 1, 1], [], []>} : vector<8x16xbf16>, vector<16x128xbf16>, vector<8x128xf32> -> vector<8x128xf32>
    %c0_3 = arith.constant 0 : index
    %c0_4 = arith.constant 0 : index
    %4 = vector.load %arg3[%c0_3, %c0_4] : memref<1x128xf32, #tpu.memory_space<vmem>>, vector<1x128xf32>
    %5 = vector.broadcast %4 : vector<1x128xf32> to vector<8x128xf32>
    %6 = arith.addf %3, %5 : vector<8x128xf32>
    %cst_5 = arith.constant 0.000000e+00 : f32
    %7 = vector.broadcast %cst_5 : f32 to vector<8x128xf32>
    %8 = arith.maximumf %6, %7 : vector<8x128xf32>
    %9 = arith.truncf %8 : vector<8x128xf32> to vector<8x128xbf16>
    %c0_6 = arith.constant 0 : index
    %c0_7 = arith.constant 0 : index
    %10 = vector.load %arg4[%c0_6, %c0_7] : memref<128x128xbf16, #tpu.memory_space<vmem>>, vector<128x128xbf16>
    %cst_8 = arith.constant dense<0.000000e+00> : vector<8x128xf32>
    %11 = tpu.matmul %9, %10, %cst_8 {dimension_numbers = #tpu.dot_dimension_numbers<[1], [0], [0], [1], [0, 0, 1, 1], [], []>} : vector<8x128xbf16>, vector<128x128xbf16>, vector<8x128xf32> -> vector<8x128xf32>
    %c0_9 = arith.constant 0 : index
    %c0_10 = arith.constant 0 : index
    %12 = vector.load %arg5[%c0_9, %c0_10] : memref<1x128xf32, #tpu.memory_space<vmem>>, vector<1x128xf32>
    %13 = vector.broadcast %12 : vector<1x128xf32> to vector<8x128xf32>
    %14 = arith.addf %11, %13 : vector<8x128xf32>
    %cst_11 = arith.constant 0.000000e+00 : f32
    %15 = vector.broadcast %cst_11 : f32 to vector<8x128xf32>
    %16 = arith.maximumf %14, %15 : vector<8x128xf32>
    %17 = arith.truncf %16 : vector<8x128xf32> to vector<8x128xbf16>
    %c0_12 = arith.constant 0 : index
    %c0_13 = arith.constant 0 : index
    %18 = vector.load %arg6[%c0_12, %c0_13] : memref<128x128xbf16, #tpu.memory_space<vmem>>, vector<128x128xbf16>
    %cst_14 = arith.constant dense<0.000000e+00> : vector<8x128xf32>
    %19 = tpu.matmul %17, %18, %cst_14 {dimension_numbers = #tpu.dot_dimension_numbers<[1], [0], [0], [1], [0, 0, 1, 1], [], []>} : vector<8x128xbf16>, vector<128x128xbf16>, vector<8x128xf32> -> vector<8x128xf32>
    %c0_15 = arith.constant 0 : index
    %c0_16 = arith.constant 0 : index
    %20 = vector.load %arg7[%c0_15, %c0_16] : memref<1x128xf32, #tpu.memory_space<vmem>>, vector<1x128xf32>
    %21 = vector.broadcast %20 : vector<1x128xf32> to vector<8x128xf32>
    %22 = arith.addf %19, %21 : vector<8x128xf32>
    %c0_17 = arith.constant 0 : index
    %c0_18 = arith.constant 0 : index
    %23 = vector.load %arg8[%c0_17, %c0_18] : memref<8x128xf32, #tpu.memory_space<vmem>>, vector<8x128xf32>
    tpu.vector_store %arg8[%c0_17, %c0_18], %22 {strides = array<i32>} : memref<8x128xf32, #tpu.memory_space<vmem>>, vector<8x128xf32>,
    return
  }
  func.func @transform_0(%arg0: i32) -> (i32, i32) {
    %c0_i32 = arith.constant 0 : i32
    %c0_i32_0 = arith.constant 0 : i32
    return %arg0, %c0_i32 : i32, i32
  }
  func.func @transform_1(%arg0: i32) -> (i32, i32) {
    %c0_i32 = arith.constant 0 : i32
    %c0_i32_0 = arith.constant 0 : i32
    %c0_i32_1 = arith.constant 0 : i32
    return %c0_i32, %c0_i32_0 : i32, i32
  }
  func.func @transform_2(%arg0: i32) -> (i32, i32) {
    %c0_i32 = arith.constant 0 : i32
    %c0_i32_0 = arith.constant 0 : i32
    %c0_i32_1 = arith.constant 0 : i32
    return %c0_i32, %c0_i32_0 : i32, i32
  }
  func.func @transform_3(%arg0: i32) -> (i32, i32) {
    %c0_i32 = arith.constant 0 : i32
    %c0_i32_0 = arith.constant 0 : i32
    %c0_i32_1 = arith.constant 0 : i32
    return %c0_i32, %c0_i32_0 : i32, i32
  }
  func.func @transform_4(%arg0: i32) -> (i32, i32) {
    %c0_i32 = arith.constant 0 : i32
    %c0_i32_0 = arith.constant 0 : i32
    %c0_i32_1 = arith.constant 0 : i32
    return %c0_i32, %c0_i32_0 : i32, i32
  }
  func.func @transform_5(%arg0: i32) -> (i32, i32) {
    %c0_i32 = arith.constant 0 : i32
    %c0_i32_0 = arith.constant 0 : i32
    %c0_i32_1 = arith.constant 0 : i32
    return %c0_i32, %c0_i32_0 : i32, i32
  }
  func.func @transform_6(%arg0: i32) -> (i32, i32) {
    %c0_i32 = arith.constant 0 : i32
    %c0_i32_0 = arith.constant 0 : i32
    %c0_i32_1 = arith.constant 0 : i32
    return %c0_i32, %c0_i32_0 : i32, i32
  }
  func.func @transform_7(%arg0: i32) -> (i32, i32) {
    %c0_i32 = arith.constant 0 : i32
    %c0_i32_0 = arith.constant 0 : i32
    return %arg0, %c0_i32 : i32, i32
  }
}

</mosaic_0001>

<bundles_post_ra>
// kernel: _dqn_forward_impl.1
= control target key start
LH: loop header
LB: loop body
LE: loop exit
PB: predicated region body
PF: predicated region fallthrough
CT: control target
= control target key end

     0   :  { %v461_v1 = vmov 0.0   ;;  %vm45_vm0 = vcmask 130048   ;;  %vm462_vm1 = vmmov 0   ;;  %s599_s0 = inlined_call_operand.vmem [shape: f32[8,16], index: 0, kind: input, shape index: {}]   ;;  %s600_s1 = inlined_call_operand.vmem [shape: bf16[16,128], index: 1, kind: input, shape index: {}]   ;;  %s601_s2 = inlined_call_operand.vmem [shape: f32[1,128], index: 2, kind: input, shape index: {}]   ;;  %s602_s3 = inlined_call_operand.vmem [shape: bf16[128,128], index: 3, kind: input, shape index: {}]   ;;  %s603_s4 = inlined_call_operand.vmem [shape: f32[1,128], index: 4, kind: input, shape index: {}]   ;;  %s604_s5 = inlined_call_operand.vmem [shape: bf16[128,128], index: 5, kind: input, shape index: {}]   ;;  %s605_s6 = inlined_call_operand.vmem [shape: f32[1,128], index: 6, kind: input, shape index: {}]   ;;  %s606_s7 = inlined_call_operand.hbm [shape: f32[8,128], index: 7, kind: output, shape index: {}]  }
   0x1   :  { %v420_v0 = vld [vmem:[%s600_s1] sm:$0xff]   ;;  %371 = vmatprep.subr.bf16.mxu0 %v461_v1  ;;  %377 = vmatprep.subr.bf16.mxu1 %v461_v1  ;;  %v422_v5 = vld [vmem:[%s602_s3 + $0x8] sm:$0xff]   ;;  %v423_v6 = vld [vmem:[%s602_s3 + $0x10] sm:$0xff]  }
   0x2   :  { %v28_v2 = vld [vmem:[%s599_s0] sm:$0xff]  ;;  %372 = vmatpush3.bf16.msra.mxu0 %v420_v0  ;;  %373 = vmatprep.mubr.msk.bf16.mxu0 %vm462_vm1, %v461_v1  ;;  %v424_v7 = vld [vmem:[%s602_s3 + $0x18] sm:$0xff]  }
   0x3   :  { %v421_v3 = vld [vmem:[%s602_s3] sm:$0xff]   ;;  %v29_v4 = vpack.c.bf16 %v28_v2, %v28_v2  ;;  %393 = vmatprep.mubr.msk.bf16.mxu1 %vm462_vm1, %v461_v1  ;;  %397 = vmatprep.subr.bf16.mxu0 %v461_v1 }
   0x4   :  { %378 = vmatpush3.bf16.msra.mxu1 %v421_v3 }
   0x5   :  { %379 = vmatprep.subr.bf16.mxu1 %v461_v1  ;;  %374 = vmatmul.mubr.msk.bf16.vlgmr.msra.gmra.mrb[0].mxu0 %vm45_vm0, %v29_v4 }
   0x6   :  { %413 = vmatprep.mubr.msk.bf16.mxu0 %vm462_vm1, %v461_v1 }
   0x8   :  { %380 = vmatpush3.bf16.msra.mxu1 %v422_v5 }
   0x9   :  { %381 = vmatprep.subr.bf16.mxu1 %v461_v1 }
   0xc   :  { %382 = vmatpush3.bf16.msra.mxu1 %v423_v6 }
   0xd   :  { %383 = vmatprep.subr.bf16.mxu1 %v461_v1 }
   0xe   :  { %12 = vsyncpa [#allocation3], 0  ;;  %v425_v8 = vld [vmem:[%s602_s3 + $0x20] sm:$0xff]   ;;  %v426_v9 = vld [vmem:[%s602_s3 + $0x28] sm:$0xff]   ;;  %s463_s14 = smov [#allocation2]  }
   0xf   :  { %v427_v10 = vld [vmem:[%s602_s3 + $0x30] sm:$0xff]   ;;  %v428_v11 = vld [vmem:[%s602_s3 + $0x38] sm:$0xff]   ;;  %v429_v12 = vld [vmem:[%s604_s5] sm:$0xff]   ;;  %s322_s15 = sshll.u32 %s463_s14, 4  ;;  %s323_s15 = int_to_ptr.vmem [resolvable:$true] %s322_s15 }
  0x10   :  { %384 = vmatpush3.bf16.msra.mxu1 %v424_v7  ;;  %398 = vmatpush3.bf16.msra.mxu0 %v429_v12  ;;  %v430_v13 = vld [vmem:[%s604_s5 + $0x8] sm:$0xff]   ;;  %v431_v14 = vld [vmem:[%s604_s5 + $0x10] sm:$0xff]   ;;  %v432_v15 = vld [vmem:[%s604_s5 + $0x18] sm:$0xff]   ;;  %p442_p1 = scmp.lt.s32.totalorder %s323_s15, %s323_s15 }
  0x11   :  { %385 = vmatprep.subr.bf16.mxu1 %v461_v1  ;;  %399 = vmatprep.subr.bf16.mxu0 %v461_v1  ;;  %v433_v16 = vld [vmem:[%s604_s5 + $0x20] sm:$0xff]   ;;  %v434_v17 = vld [vmem:[%s604_s5 + $0x28] sm:$0xff]   ;;  %v435_v26 = vld [vmem:[%s604_s5 + $0x30] sm:$0xff]  }
  0x12   :  { %v330_v18 = vld [vmem:[%s601_s2] ss:$0 sm:$0xff]  ;;  %v436_v27 = vld [vmem:[%s604_s5 + $0x38] sm:$0xff]  }
  0x13   :  { %v333_v28 = vld [vmem:[%s603_s4] ss:$0 sm:$0xff]  ;;  %s437_s4 = scalar_lea.vmem %s323_s15, 128 }
  0x14   :  { %386 = vmatpush3.bf16.msra.mxu1 %v425_v8  ;;  %400 = vmatpush3.bf16.msra.mxu0 %v430_v13  ;;  %v342_v36 = vld [vmem:[%s605_s6] ss:$0 sm:$0xff]  ;;  %p438_p0 = scmp.ne.s32.totalorder %s323_s15, %s437_s4  ;;  %p443_p2 = scmp.lt.s32.totalorder %s437_s4, %s437_s4 }
  0x15   :  { %387 = vmatprep.subr.bf16.mxu1 %v461_v1  ;;  %401 = vmatprep.subr.bf16.mxu0 %v461_v1 }
  0x16   :  { %p444_p3 = por %p443_p2, %p442_p1 }
  0x18   :  { %388 = vmatpush3.bf16.msra.mxu1 %v426_v9  ;;  %402 = vmatpush3.bf16.msra.mxu0 %v431_v14  ;;  %p445_p4 = pnand %p444_p3, %p438_p0 }
  0x19   :  { %389 = vmatprep.subr.bf16.mxu1 %v461_v1  ;;  %403 = vmatprep.subr.bf16.mxu0 %v461_v1 }
  0x1c   :  { %390 = vmatpush3.bf16.msra.mxu1 %v427_v10  ;;  %404 = vmatpush3.bf16.msra.mxu0 %v432_v15 }
  0x1d   :  { %391 = vmatprep.subr.bf16.mxu1 %v461_v1  ;;  %405 = vmatprep.subr.bf16.mxu0 %v461_v1 }
  0x20   :  { %392 = vmatpush3.bf16.msra.mxu1 %v428_v11  ;;  %406 = vmatpush3.bf16.msra.mxu0 %v433_v16 }
  0x21   :  { %407 = vmatprep.subr.bf16.mxu0 %v461_v1 }
  0x24   :  { %408 = vmatpush3.bf16.msra.mxu0 %v434_v17 }
  0x25   :  { %409 = vmatprep.subr.bf16.mxu0 %v461_v1 }
  0x28   :  { %410 = vmatpush3.bf16.msra.mxu0 %v435_v26 }
  0x29   :  { %411 = vmatprep.subr.bf16.mxu0 %v461_v1 }
  0x2c   :  { %412 = vmatpush3.bf16.msra.mxu0 %v436_v27 }
  0xd8   :  { %v83_v19 = vpop.f32.mrb[0].mxu0 }
  0xd9   :  { %v84_v20 = vadd.f32 %v330_v18, %v83_v19  ;;  %v375_v21 = vpop.f32.mrb[1].mxu0 }
  0xda   :  { %v86_v22 = vpop.f32.mrb[2].mxu0 }
  0xdb   :  { %v89_v23 = vmax.f32 %v84_v20, 0.0  ;;  %v376_v24 = vpop.f32.mrb[3].mxu0 }
  0xdd   :  { %v90_v25 = vpack.c.bf16 %v89_v23, %v89_v23 }
  0xdf   :  { %394 = vmatmul.mubr.bf16.vlgmr.msra.gmra.mrb[0].mxu1 %v90_v25 }
 0x1b2   :  { %v196_v29 = vpop.f32.mrb[0].mxu1 }
 0x1b3   :  { %v197_v30 = vadd.f32 %v333_v28, %v196_v29  ;;  %v395_v31 = vpop.f32.mrb[1].mxu1 }
 0x1b4   :  { %v199_v32 = vpop.f32.mrb[2].mxu1 }
 0x1b5   :  { %v202_v33 = vmax.f32 %v197_v30, 0.0  ;;  %v396_v34 = vpop.f32.mrb[3].mxu1 }
 0x1b7   :  { %v203_v35 = vpack.c.bf16 %v202_v33, %v202_v33 }
 0x1b9   :  { %414 = vmatmul.mubr.bf16.vlgmr.msra.gmra.mrb[4].mxu0 %v203_v35 }
 0x28c   :  { %v309_v37 = vpop.f32.mrb[4].mxu0 }
 0x28d   :  { %v310_v38 = vadd.f32 %v342_v36, %v309_v37  ;;  %v415_v39 = vpop.f32.mrb[5].mxu0 }
 0x28e   :  { %v312_v40 = vpop.f32.mrb[6].mxu0 }
 0x28f   :  { %315 = vst [vmem:[#allocation2] sm:$0xff] %v310_v38  ;;  %v416_v41 = vpop.f32.mrb[7].mxu0 }
 0x290   :  { %448 = shalt.err (!%p445_p4)
}
 0x291   :  { %s449_s6 = scalar_lea.hbm %s606_s7, 128 }
 0x292   :  { %p450_p5 = scmp.ne.s32.totalorder %s606_s7, %s449_s6  ;;  %p453_p6 = scmp.lt.u32.totalorder %s449_s6, %s606_s7 }
 0x294   :  { %p455_p7 = pnand %p453_p6, %p450_p5 }
 0x296   :  { %458 = shalt.err (!%p455_p7)
}
 0x297   :  { %325 = dma.vmem_to_hbm [thread:$0]  %s323_s15, 128, %s606_s7, [#allocation3]  }
 0x298   :  { %459 = dma.done.wait [#allocation3], 128  }
 0x299   :  { %460 = vsyncadd [#allocation3], 4294967168 }
 0x29a   :  { %329 = vsyncpa [#allocation3], 1 }

// kernel: _dqn_forward_impl.1
= control target key start
LH: loop header
LB: loop body
LE: loop exit
PB: predicated region body
PF: predicated region fallthrough
CT: control target
= control target key end

     0   :  { %v461_v1 = vmov 0.0   ;;  %vm45_vm0 = vcmask 130048   ;;  %vm462_vm1 = vmmov 0   ;;  %s599_s0 = inlined_call_operand.vmem [shape: f32[8,16], index: 0, kind: input, shape index: {}]   ;;  %s600_s1 = inlined_call_operand.vmem [shape: bf16[16,128], index: 1, kind: input, shape index: {}]   ;;  %s601_s2 = inlined_call_operand.vmem [shape: f32[1,128], index: 2, kind: input, shape index: {}]   ;;  %s602_s3 = inlined_call_operand.vmem [shape: bf16[128,128], index: 3, kind: input, shape index: {}]   ;;  %s603_s4 = inlined_call_operand.vmem [shape: f32[1,128], index: 4, kind: input, shape index: {}]   ;;  %s604_s5 = inlined_call_operand.vmem [shape: bf16[128,128], index: 5, kind: input, shape index: {}]   ;;  %s605_s6 = inlined_call_operand.vmem [shape: f32[1,128], index: 6, kind: input, shape index: {}]   ;;  %s606_s7 = inlined_call_operand.hbm [shape: f32[8,128], index: 7, kind: output, shape index: {}]  }
   0x1   :  { %v420_v0 = vld [vmem:[%s600_s1] sm:$0xff]   ;;  %371 = vmatprep.subr.bf16.mxu0 %v461_v1  ;;  %377 = vmatprep.subr.bf16.mxu1 %v461_v1  ;;  %v422_v5 = vld [vmem:[%s602_s3 + $0x8] sm:$0xff]   ;;  %v423_v6 = vld [vmem:[%s602_s3 + $0x10] sm:$0xff]  }
   0x2   :  { %v28_v2 = vld [vmem:[%s599_s0] sm:$0xff]  ;;  %372 = vmatpush3.bf16.msra.mxu0 %v420_v0  ;;  %373 = vmatprep.mubr.msk.bf16.mxu0 %vm462_vm1, %v461_v1  ;;  %v424_v7 = vld [vmem:[%s602_s3 + $0x18] sm:$0xff]  }
   0x3   :  { %v421_v3 = vld [vmem:[%s602_s3] sm:$0xff]   ;;  %v29_v4 = vpack.c.bf16 %v28_v2, %v28_v2  ;;  %393 = vmatprep.mubr.msk.bf16.mxu1 %vm462_vm1, %v461_v1  ;;  %397 = vmatprep.subr.bf16.mxu0 %v461_v1 }
   0x4   :  { %378 = vmatpush3.bf16.msra.mxu1 %v421_v3 }
   0x5   :  { %379 = vmatprep.subr.bf16.mxu1 %v461_v1  ;;  %374 = vmatmul.mubr.msk.bf16.vlgmr.msra.gmra.mrb[0].mxu0 %vm45_vm0, %v29_v4 }
   0x6   :  { %413 = vmatprep.mubr.msk.bf16.mxu0 %vm462_vm1, %v461_v1 }
   0x8   :  { %380 = vmatpush3.bf16.msra.mxu1 %v422_v5 }
   0x9   :  { %381 = vmatprep.subr.bf16.mxu1 %v461_v1 }
   0xc   :  { %382 = vmatpush3.bf16.msra.mxu1 %v423_v6 }
   0xd   :  { %383 = vmatprep.subr.bf16.mxu1 %v461_v1 }
   0xe   :  { %12 = vsyncpa [#allocation3], 0  ;;  %v425_v8 = vld [vmem:[%s602_s3 + $0x20] sm:$0xff]   ;;  %v426_v9 = vld [vmem:[%s602_s3 + $0x28] sm:$0xff]   ;;  %s463_s14 = smov [#allocation2]  }
   0xf   :  { %v427_v10 = vld [vmem:[%s602_s3 + $0x30] sm:$0xff]   ;;  %v428_v11 = vld [vmem:[%s602_s3 + $0x38] sm:$0xff]   ;;  %v429_v12 = vld [vmem:[%s604_s5] sm:$0xff]   ;;  %s322_s15 = sshll.u32 %s463_s14, 4  ;;  %s323_s15 = int_to_ptr.vmem [resolvable:$true] %s322_s15 }
  0x10   :  { %384 = vmatpush3.bf16.msra.mxu1 %v424_v7  ;;  %398 = vmatpush3.bf16.msra.mxu0 %v429_v12  ;;  %v430_v13 = vld [vmem:[%s604_s5 + $0x8] sm:$0xff]   ;;  %v431_v14 = vld [vmem:[%s604_s5 + $0x10] sm:$0xff]   ;;  %v432_v15 = vld [vmem:[%s604_s5 + $0x18] sm:$0xff]   ;;  %p442_p1 = scmp.lt.s32.totalorder %s323_s15, %s323_s15 }
  0x11   :  { %385 = vmatprep.subr.bf16.mxu1 %v461_v1  ;;  %399 = vmatprep.subr.bf16.mxu0 %v461_v1  ;;  %v433_v16 = vld [vmem:[%s604_s5 + $0x20] sm:$0xff]   ;;  %v434_v17 = vld [vmem:[%s604_s5 + $0x28] sm:$0xff]   ;;  %v435_v26 = vld [vmem:[%s604_s5 + $0x30] sm:$0xff]  }
  0x12   :  { %v330_v18 = vld [vmem:[%s601_s2] ss:$0 sm:$0xff]  ;;  %v436_v27 = vld [vmem:[%s604_s5 + $0x38] sm:$0xff]  }
  0x13   :  { %v333_v28 = vld [vmem:[%s603_s4] ss:$0 sm:$0xff]  ;;  %s437_s4 = scalar_lea.vmem %s323_s15, 128 }
  0x14   :  { %386 = vmatpush3.bf16.msra.mxu1 %v425_v8  ;;  %400 = vmatpush3.bf16.msra.mxu0 %v430_v13  ;;  %v342_v36 = vld [vmem:[%s605_s6] ss:$0 sm:$0xff]  ;;  %p438_p0 = scmp.ne.s32.totalorder %s323_s15, %s437_s4  ;;  %p443_p2 = scmp.lt.s32.totalorder %s437_s4, %s437_s4 }
  0x15   :  { %387 = vmatprep.subr.bf16.mxu1 %v461_v1  ;;  %401 = vmatprep.subr.bf16.mxu0 %v461_v1 }
  0x16   :  { %p444_p3 = por %p443_p2, %p442_p1 }
  0x18   :  { %388 = vmatpush3.bf16.msra.mxu1 %v426_v9  ;;  %402 = vmatpush3.bf16.msra.mxu0 %v431_v14  ;;  %p445_p4 = pnand %p444_p3, %p438_p0 }
  0x19   :  { %389 = vmatprep.subr.bf16.mxu1 %v461_v1  ;;  %403 = vmatprep.subr.bf16.mxu0 %v461_v1 }
  0x1c   :  { %390 = vmatpush3.bf16.msra.mxu1 %v427_v10  ;;  %404 = vmatpush3.bf16.msra.mxu0 %v432_v15 }
  0x1d   :  { %391 = vmatprep.subr.bf16.mxu1 %v461_v1  ;;  %405 = vmatprep.subr.bf16.mxu0 %v461_v1 }
  0x20   :  { %392 = vmatpush3.bf16.msra.mxu1 %v428_v11  ;;  %406 = vmatpush3.bf16.msra.mxu0 %v433_v16 }
  0x21   :  { %407 = vmatprep.subr.bf16.mxu0 %v461_v1 }
  0x24   :  { %408 = vmatpush3.bf16.msra.mxu0 %v434_v17 }
  0x25   :  { %409 = vmatprep.subr.bf16.mxu0 %v461_v1 }
  0x28   :  { %410 = vmatpush3.bf16.msra.mxu0 %v435_v26 }
  0x29   :  { %411 = vmatprep.subr.bf16.mxu0 %v461_v1 }
  0x2c   :  { %412 = vmatpush3.bf16.msra.mxu0 %v436_v27 }
  0xd8   :  { %v83_v19 = vpop.f32.mrb[0].mxu0 }
  0xd9   :  { %v84_v20 = vadd.f32 %v330_v18, %v83_v19  ;;  %v375_v21 = vpop.f32.mrb[1].mxu0 }
  0xda   :  { %v86_v22 = vpop.f32.mrb[2].mxu0 }
  0xdb   :  { %v89_v23 = vmax.f32 %v84_v20, 0.0  ;;  %v376_v24 = vpop.f32.mrb[3].mxu0 }
  0xdd   :  { %v90_v25 = vpack.c.bf16 %v89_v23, %v89_v23 }
  0xdf   :  { %394 = vmatmul.mubr.bf16.vlgmr.msra.gmra.mrb[0].mxu1 %v90_v25 }
 0x1b2   :  { %v196_v29 = vpop.f32.mrb[0].mxu1 }
 0x1b3   :  { %v197_v30 = vadd.f32 %v333_v28, %v196_v29  ;;  %v395_v31 = vpop.f32.mrb[1].mxu1 }
 0x1b4   :  { %v199_v32 = vpop.f32.mrb[2].mxu1 }
 0x1b5   :  { %v202_v33 = vmax.f32 %v197_v30, 0.0  ;;  %v396_v34 = vpop.f32.mrb[3].mxu1 }
 0x1b7   :  { %v203_v35 = vpack.c.bf16 %v202_v33, %v202_v33 }
 0x1b9   :  { %414 = vmatmul.mubr.bf16.vlgmr.msra.gmra.mrb[4].mxu0 %v203_v35 }
 0x28c   :  { %v309_v37 = vpop.f32.mrb[4].mxu0 }
 0x28d   :  { %v310_v38 = vadd.f32 %v342_v36, %v309_v37  ;;  %v415_v39 = vpop.f32.mrb[5].mxu0 }
 0x28e   :  { %v312_v40 = vpop.f32.mrb[6].mxu0 }
 0x28f   :  { %315 = vst [vmem:[#allocation2] sm:$0xff] %v310_v38  ;;  %v416_v41 = vpop.f32.mrb[7].mxu0 }
 0x290   :  { %448 = shalt.err (!%p445_p4)
}
 0x291   :  { %s449_s6 = scalar_lea.hbm %s606_s7, 128 }
 0x292   :  { %p450_p5 = scmp.ne.s32.totalorder %s606_s7, %s449_s6  ;;  %p453_p6 = scmp.lt.u32.totalorder %s449_s6, %s606_s7 }
 0x294   :  { %p455_p7 = pnand %p453_p6, %p450_p5 }
 0x296   :  { %458 = shalt.err (!%p455_p7)
}
 0x297   :  { %325 = dma.vmem_to_hbm [thread:$0]  %s323_s15, 128, %s606_s7, [#allocation3]  }
 0x298   :  { %459 = dma.done.wait [#allocation3], 128  }
 0x299   :  { %460 = vsyncadd [#allocation3], 4294967168 }
 0x29a   :  { %329 = vsyncpa [#allocation3], 1 }

</bundles_post_ra>
